<compile_context>
chip_gen: v7x
topology: tpu7x:2x2x1
jax: 0.10.0
libtpu: 0.0.40
codegen_flags: <defaults>
</compile_context>

<pallas_src>
import jax
import jax.numpy as jnp
from jax.experimental import pallas as pl
from jax.experimental.pallas import tpu as pltpu


# ----------------------------- Pallas kernel ------------------------------- #

def _moe_fused_kernel(x_ref, w1_ref, b1_ref, w2_ref, b2_ref, gwe_ref, gw_ref, o_ref):
    # First GEMM over all experts at once: [tm, H] @ [H, E*F] -> [tm, E*F]
    h = jnp.dot(x_ref[...], w1_ref[...], preferred_element_type=jnp.float32)
    h = jnp.maximum(h + b1_ref[...], 0.0)

    # Scale each expert's F-wide block of h by its routing weight.
    # gwe is pre-expanded to [tm, E*F] in the wrapper (no in-kernel reshape).
    hs = h * gwe_ref[...]

    # Second GEMM: block-diagonal per-expert contraction folded into one
    # [tm, E*F] @ [E*F, Hp] -> [tm, Hp]   (Hp = H padded to 128 lanes)
    out = jnp.dot(hs, w2_ref[...], preferred_element_type=jnp.float32)

    # Routed bias: sum_e gw[:, e] * b2[e]  ==  [tm, E] @ [E, Hp]
    out = out + jnp.dot(gw_ref[...], b2_ref[...], preferred_element_type=jnp.float32)

    o_ref[...] = out.astype(o_ref.dtype)


# ------------------------------ Python wrapper ----------------------------- #

def _pick_token_tile(T):
    # Prefer >= 2 programs on the parallel token axis (v7x has 2 TensorCores),
    # with tm a multiple of 8 that divides T.
    for tm in (512, 256, 128, 64, 32, 16, 8):
        if tm < T and T % tm == 0:
            return tm
    return T


def moe_forward(x, params, n_experts_per_token):
    B, S, H = x.shape
    T = B * S
    E, _, F = params["w1"].shape
    EF = E * F
    Hp = ((H + 127) // 128) * 128  # lane-dense output width
    x2 = x.reshape(T, H)

    # --- gate + top-k routing + softmax: tiny, left to plain XLA ---
    logits = x2 @ params["wg"] + params["bg"]                           # [T, E]
    k = n_experts_per_token
    top_vals, top_idx = jax.lax.top_k(logits, k)                        # [T, k]
    top_w = jax.nn.softmax(top_vals, axis=-1)                           # [T, k]
    dense_w = jnp.sum(
        jax.nn.one_hot(top_idx, E, dtype=jnp.float32) * top_w[..., None], axis=1
    )                                                                   # [T, E]
    gw_exp = jnp.repeat(dense_w, F, axis=1)                             # [T, E*F]

    # --- pack weights lane-dense for the fused kernel ---
    w1f = params["w1"].transpose(1, 0, 2).reshape(H, EF)                # [H, E*F]
    b1f = params["b1"].reshape(1, EF)                                   # [1, E*F]
    w2f = jnp.pad(params["w2"].reshape(EF, H), ((0, 0), (0, Hp - H)))   # [E*F, Hp]
    b2p = jnp.pad(params["b2"], ((0, 0), (0, Hp - H)))                  # [E, Hp]

    tm = _pick_token_tile(T)
    grid = (T // tm,)

    out_p = pl.pallas_call(
        _moe_fused_kernel,
        out_shape=jax.ShapeDtypeStruct((T, Hp), x.dtype),
        grid=grid,
        in_specs=[
            pl.BlockSpec((tm, H), lambda i: (i, 0)),     # x tokens
            pl.BlockSpec((H, EF), lambda i: (0, 0)),     # packed W1
            pl.BlockSpec((1, EF), lambda i: (0, 0)),     # packed b1
            pl.BlockSpec((EF, Hp), lambda i: (0, 0)),    # packed W2 (padded N)
            pl.BlockSpec((E, Hp), lambda i: (0, 0)),     # b2 (padded N)
            pl.BlockSpec((tm, EF), lambda i: (i, 0)),    # routing weights, expanded
            pl.BlockSpec((tm, E), lambda i: (i, 0)),     # routing weights, per-expert
        ],
        out_specs=pl.BlockSpec((tm, Hp), lambda i: (i, 0)),
        compiler_params=pltpu.CompilerParams(
            dimension_semantics=("parallel",),
            vmem_limit_bytes=32 * 1024 * 1024,  # safe on v5e/v6e/v7x; usage is tiny
        ),
    )(x2, w1f, b1f, w2f, b2p, gw_exp, dense_w)

    return out_p[:, :H].reshape(B, S, H)


# ------------------------------ pure-JAX reference -------------------------- #

def moe_reference(x, params, k):
    B, S, H = x.shape
    T = B * S
    E, _, F = params["w1"].shape
    x2 = x.reshape(T, H)
    logits = x2 @ params["wg"] + params["bg"]
    top_vals, top_idx = jax.lax.top_k(logits, k)
    top_w = jax.nn.softmax(top_vals, axis=-1)
    out = jnp.zeros((T, H), jnp.float32)
    for e in range(E):
        h = jnp.maximum(x2 @ params["w1"][e] + params["b1"][e], 0.0)
        y = h @ params["w2"][e] + params["b2"][e]
        w_e = jnp.sum(jnp.where(top_idx == e, top_w, 0.0), axis=-1)     # [T]
        out = out + w_e[:, None] * y
    return out.reshape(B, S, H)


# ----------------------------------- main ----------------------------------- #

if __name__ == "__main__":
    B, S = 2, 8
    hidden_size, d_ff = 32, 64
    num_experts, n_experts_per_token = 4, 2

    key = jax.random.PRNGKey(0)
    k_x, k_wg, k_bg, k_w1, k_b1, k_w2, k_b2 = jax.random.split(key, 7)

    x = jax.random.normal(k_x, (B, S, hidden_size), jnp.float32)

    def init(k, shape, fan_in):
        bound = 1.0 / jnp.sqrt(jnp.float32(fan_in))
        return jax.random.uniform(k, shape, jnp.float32, -bound, bound)

    params = {
        "wg": init(k_wg, (hidden_size, num_experts), hidden_size),
        "bg": init(k_bg, (num_experts,), hidden_size),
        "w1": init(k_w1, (num_experts, hidden_size, d_ff), hidden_size),
        "b1": init(k_b1, (num_experts, d_ff), hidden_size),
        "w2": init(k_w2, (num_experts, d_ff, hidden_size), d_ff),
        "b2": init(k_b2, (num_experts, hidden_size), d_ff),
    }

    out = moe_forward(x, params, n_experts_per_token)
    jax.block_until_ready(out)

    ref = moe_reference(x, params, n_experts_per_token)
    assert out.shape == x.shape and out.dtype == x.dtype
    assert jnp.allclose(out, ref, rtol=1e-4, atol=1e-5), "mismatch vs reference"

    print("KERNEL_OK")
</pallas_src>

<mosaic_0001>
module attributes {stable_mosaic.version = 11 : i64} {
  func.func @_moe_fused_kernel(%arg0: i32, %arg1: memref<8x32xf32, #tpu.memory_space<vmem>>, %arg2: memref<32x256xf32, #tpu.memory_space<vmem>>, %arg3: memref<1x256xf32, #tpu.memory_space<vmem>>, %arg4: memref<256x128xf32, #tpu.memory_space<vmem>>, %arg5: memref<4x128xf32, #tpu.memory_space<vmem>>, %arg6: memref<8x256xf32, #tpu.memory_space<vmem>>, %arg7: memref<8x4xf32, #tpu.memory_space<vmem>>, %arg8: memref<8x128xf32, #tpu.memory_space<vmem>>) attributes {dimension_semantics = [#tpu.dimension_semantics<parallel>], iteration_bounds = array<i64: 2>, scalar_prefetch = 0 : i64, scratch_operands = 0 : i64, tpu.core_type = #tpu.core_type<tc>, window_params = [{transform_indices = @transform_0, window_bounds = array<i64: 8, 32>}, {pipeline_mode = #tpu.pipeline_mode<synchronous>, transform_indices = @transform_1, window_bounds = array<i64: 32, 256>}, {pipeline_mode = #tpu.pipeline_mode<synchronous>, transform_indices = @transform_2, window_bounds = array<i64: 1, 256>}, {pipeline_mode = #tpu.pipeline_mode<synchronous>, transform_indices = @transform_3, window_bounds = array<i64: 256, 128>}, {pipeline_mode = #tpu.pipeline_mode<synchronous>, transform_indices = @transform_4, window_bounds = array<i64: 4, 128>}, {transform_indices = @transform_5, window_bounds = array<i64: 8, 256>}, {transform_indices = @transform_6, window_bounds = array<i64: 8, 4>}, {transform_indices = @transform_7, window_bounds = array<i64: 8, 128>}]} {
    %c0 = arith.constant 0 : index
    %c0_0 = arith.constant 0 : index
    %0 = vector.load %arg1[%c0, %c0_0] : memref<8x32xf32, #tpu.memory_space<vmem>>, vector<8x32xf32>
    %c0_1 = arith.constant 0 : index
    %c0_2 = arith.constant 0 : index
    %1 = vector.load %arg2[%c0_1, %c0_2] : memref<32x256xf32, #tpu.memory_space<vmem>>, vector<32x256xf32>
    %cst = arith.constant dense<0.000000e+00> : vector<8x256xf32>
    %2 = tpu.matmul %0, %1, %cst {dimension_numbers = #tpu.dot_dimension_numbers<[1], [0], [0], [1], [0, 0, 1, 1], [], []>} : vector<8x32xf32>, vector<32x256xf32>, vector<8x256xf32> -> vector<8x256xf32>
    %c0_3 = arith.constant 0 : index
    %c0_4 = arith.constant 0 : index
    %3 = vector.load %arg3[%c0_3, %c0_4] : memref<1x256xf32, #tpu.memory_space<vmem>>, vector<1x256xf32>
    %4 = vector.broadcast %3 : vector<1x256xf32> to vector<8x256xf32>
    %5 = arith.addf %2, %4 : vector<8x256xf32>
    %cst_5 = arith.constant 0.000000e+00 : f32
    %6 = vector.broadcast %cst_5 : f32 to vector<8x256xf32>
    %7 = arith.maximumf %5, %6 : vector<8x256xf32>
    %c0_6 = arith.constant 0 : index
    %c0_7 = arith.constant 0 : index
    %8 = vector.load %arg6[%c0_6, %c0_7] : memref<8x256xf32, #tpu.memory_space<vmem>>, vector<8x256xf32>
    %9 = arith.mulf %7, %8 : vector<8x256xf32>
    %c0_8 = arith.constant 0 : index
    %c0_9 = arith.constant 0 : index
    %10 = vector.load %arg4[%c0_8, %c0_9] : memref<256x128xf32, #tpu.memory_space<vmem>>, vector<256x128xf32>
    %cst_10 = arith.constant dense<0.000000e+00> : vector<8x128xf32>
    %11 = tpu.matmul %9, %10, %cst_10 {dimension_numbers = #tpu.dot_dimension_numbers<[1], [0], [0], [1], [0, 0, 1, 1], [], []>} : vector<8x256xf32>, vector<256x128xf32>, vector<8x128xf32> -> vector<8x128xf32>
    %c0_11 = arith.constant 0 : index
    %c0_12 = arith.constant 0 : index
    %12 = vector.load %arg7[%c0_11, %c0_12] : memref<8x4xf32, #tpu.memory_space<vmem>>, vector<8x4xf32>
    %c0_13 = arith.constant 0 : index
    %c0_14 = arith.constant 0 : index
    %13 = vector.load %arg5[%c0_13, %c0_14] : memref<4x128xf32, #tpu.memory_space<vmem>>, vector<4x128xf32>
    %cst_15 = arith.constant dense<0.000000e+00> : vector<8x128xf32>
    %14 = tpu.matmul %12, %13, %cst_15 {dimension_numbers = #tpu.dot_dimension_numbers<[1], [0], [0], [1], [0, 0, 1, 1], [], []>} : vector<8x4xf32>, vector<4x128xf32>, vector<8x128xf32> -> vector<8x128xf32>
    %15 = arith.addf %11, %14 : vector<8x128xf32>
    %c0_16 = arith.constant 0 : index
    %c0_17 = arith.constant 0 : index
    %16 = vector.load %arg8[%c0_16, %c0_17] : memref<8x128xf32, #tpu.memory_space<vmem>>, vector<8x128xf32>
    tpu.vector_store %arg8[%c0_16, %c0_17], %15 {strides = array<i32>} : memref<8x128xf32, #tpu.memory_space<vmem>>, vector<8x128xf32>,
    return
  }
  func.func @transform_0(%arg0: i32) -> (i32, i32) {
    %c0_i32 = arith.constant 0 : i32
    %c0_i32_0 = arith.constant 0 : i32
    return %arg0, %c0_i32 : i32, i32
  }
  func.func @transform_1(%arg0: i32) -> (i32, i32) {
    %c0_i32 = arith.constant 0 : i32
    %c0_i32_0 = arith.constant 0 : i32
    %c0_i32_1 = arith.constant 0 : i32
    return %c0_i32, %c0_i32_0 : i32, i32
  }
  func.func @transform_2(%arg0: i32) -> (i32, i32) {
    %c0_i32 = arith.constant 0 : i32
    %c0_i32_0 = arith.constant 0 : i32
    %c0_i32_1 = arith.constant 0 : i32
    return %c0_i32, %c0_i32_0 : i32, i32
  }
  func.func @transform_3(%arg0: i32) -> (i32, i32) {
    %c0_i32 = arith.constant 0 : i32
    %c0_i32_0 = arith.constant 0 : i32
    %c0_i32_1 = arith.constant 0 : i32
    return %c0_i32, %c0_i32_0 : i32, i32
  }
  func.func @transform_4(%arg0: i32) -> (i32, i32) {
    %c0_i32 = arith.constant 0 : i32
    %c0_i32_0 = arith.constant 0 : i32
    %c0_i32_1 = arith.constant 0 : i32
    return %c0_i32, %c0_i32_0 : i32, i32
  }
  func.func @transform_5(%arg0: i32) -> (i32, i32) {
    %c0_i32 = arith.constant 0 : i32
    %c0_i32_0 = arith.constant 0 : i32
    return %arg0, %c0_i32 : i32, i32
  }
  func.func @transform_6(%arg0: i32) -> (i32, i32) {
    %c0_i32 = arith.constant 0 : i32
    %c0_i32_0 = arith.constant 0 : i32
    return %arg0, %c0_i32 : i32, i32
  }
  func.func @transform_7(%arg0: i32) -> (i32, i32) {
    %c0_i32 = arith.constant 0 : i32
    %c0_i32_0 = arith.constant 0 : i32
    return %arg0, %c0_i32 : i32, i32
  }
}

</mosaic_0001>

<bundles_post_ra>
// kernel: tpu_custom_call.1
= control target key start
LH: loop header
LB: loop body
LE: loop exit
PB: predicated region body
PF: predicated region fallthrough
CT: control target
= control target key end

     0   :  { %12 = vsyncpa [#allocation3], 0  ;;  %s1411_s0 = inlined_call_operand.hbm [shape: f32[16,32], index: 0, kind: input, shape index: {}]   ;;  %s1412_s1 = inlined_call_operand.hbm [shape: f32[32,256], index: 1, kind: input, shape index: {}]   ;;  %s1413_s2 = inlined_call_operand.vmem [shape: f32[1,256], index: 2, kind: input, shape index: {}]   ;;  %s1414_s3 = inlined_call_operand.hbm [shape: f32[256,128], index: 3, kind: input, shape index: {}]   ;;  %s1415_s4 = inlined_call_operand.vmem [shape: f32[4,128], index: 4, kind: input, shape index: {}]   ;;  %s1416_s5 = inlined_call_operand.vmem [shape: f32[16,256], index: 5, kind: input, shape index: {}]   ;;  %s1417_s6 = inlined_call_operand.vmem [shape: f32[16,4], index: 6, kind: input, shape index: {}]   ;;  %s1418_s7 = inlined_call_operand.hbm [shape: f32[16,128], index: 7, kind: output, shape index: {}]  }
   0x1   :  { %14 = vsyncpa [#allocation3 + $0x1], 0 }
   0x2   :  { %15 = vsyncpa [#allocation6], 0 }
   0x3   :  { %16 = vsyncpa [#allocation4], 0 }
   0x4   :  { %18 = vsyncpa [#allocation4 + $0x1], 0  ;;  %s1158_s24 = smov 0   ;;  %s1160_s25 = smov 0  }
   0x5   :  { %s1162_s26 = smov 0   ;;  %s1164_s27 = smov 0  }
   0x6 LB: > { %s1179_s28 = sadd.s32 4294967295, %s1106_s27   ;;  %s772_s29 = sadd.s32 4294967294, %s1106_s27   ;;  %s1106_s27 = sphi %s1164_s27, %s1438_s27   ;;  %s1102_s26 = sphi %s1162_s26, %s1437_s26   ;;  %s1098_s25 = sphi %s1160_s25, %s1436_s25   ;;  %s1094_s24 = sphi %s1158_s24, %s1435_s24  }
   0x7   : > { %p44_p0 = scmp.ne.s32.totalorder %s1098_s25, %s1094_s24  ;;  %p1419_p1 = scmp.eq.s32.totalorder %s1179_s28, 0 }
   0x8   : > { %p210_p3 = scmp.eq.s32.totalorder %s772_s29, 1  ;;  %p773_p5 = scmp.ge.s32.totalorder %s1106_s27, 1 }
   0x9   : > { %p1188_p4 = por %p1419_p1, %p44_p0  ;;  %p217_p7 = scmp.lt.s32.totalorder %s1106_s27, 3 }
   0xa   : > { %p1193_p6 = por %p210_p3, %p44_p0  ;;  %s1108_s10 = smov [#allocation5]  }
   0xb   : > { %s1422_s30 = scalar_select %p1188_p4, 1, 0 }
   0xc   : > { %s1423_s8 = scalar_select %p1193_p6, 1, 0 }
   0xd   : > { %p1198_p8 = pnand %p773_p5, %p217_p7  ;;  %s229_s11 = sshll.u32 %s1108_s10, 4  ;;  %s1202_s11 = int_to_ptr.vmem [resolvable:$true] %s229_s11 }
   0xe   : > { %s1109_s13 = smov [#allocation7]   ;;  %s950_s17 = scalar_lea.hbm %s1412_s1, 1024 }
   0xf   : > { %p889_p9 = pneg %p1198_p8  ;;  %s245_s14 = sshll.u32 %s1109_s13, 4  ;;  %s1213_s14 = int_to_ptr.vmem [resolvable:$true] %s245_s14 }
  0x10   : > { %p951_p12 = scmp.ne.s32.totalorder %s1412_s1, %s950_s17  ;;  %p957_p5 = scmp.lt.u32.totalorder %s950_s17, %s1412_s1 }
  0x11   : > { %p1209_p11 = pnand %p889_p9, %p1419_p1 }
  0x13   : > { %p952_p13 = pneg %p1209_p11 }
  0x15   : > { %p953_p0 = pnand %p952_p13, %p951_p12 }
  0x17   : > { %p954_p3 = pneg %p953_p0 }
  0x19   : > { %p959_p7 = pnand %p957_p5, %p954_p3 }
  0x1b   : > { %962 = shalt.err (!%p959_p7)
}
  0x1c   : > { %s963_s22 = scalar_lea.vmem %s1202_s11, 1024  ;;  %p971_p2 = scmp.lt.s32.totalorder %s1202_s11, %s1202_s11 }
  0x1d   : > { %p964_p9 = scmp.ne.s32.totalorder %s1202_s11, %s963_s22  ;;  %p972_p12 = scmp.lt.s32.totalorder %s963_s22, %s963_s22 }
  0x1f   : > { %p966_p10 = pnand %p964_p9, %p952_p13  ;;  %p973_p0 = por %p972_p12, %p971_p2 }
  0x21   : > { %p967_p1 = pneg %p966_p10 }
  0x23   : > { %p974_p6 = pnand %p973_p0, %p967_p1 }
  0x25   : > { %977 = shalt.err (!%p974_p6)
}
  0x26   : > { %s1110_s23 = smov 256   ;;  %s1111_s29 = smov 16  }
  0x27   : > { %892 = dma.hbm_to_vmem [thread:$0]  (!%p1209_p11), %s1412_s1, 1024, %s1202_s11, [#allocation6], %s1110_s23, %s1110_s23, %s1111_s29  }
  0x28   : > { %s978_s17 = scalar_lea.hbm %s1414_s3, 4096 }
  0x29   : > { %p979_p2 = scmp.ne.s32.totalorder %s1414_s3, %s978_s17  ;;  %p985_p10 = scmp.lt.u32.totalorder %s978_s17, %s1414_s3 }
  0x2b   : > { %p981_p1 = pnand %p979_p2, %p952_p13 }
  0x2d   : > { %p982_p6 = pneg %p981_p1 }
  0x2f   : > { %p987_p3 = pnand %p985_p10, %p982_p6 }
  0x31   : > { %990 = shalt.err (!%p987_p3)
}
  0x32   : > { %s991_s11 = scalar_lea.vmem %s1213_s14, 4096  ;;  %p999_p12 = scmp.lt.s32.totalorder %s1213_s14, %s1213_s14 }
  0x33   : > { %p992_p5 = scmp.ne.s32.totalorder %s1213_s14, %s991_s11  ;;  %p1000_p0 = scmp.lt.s32.totalorder %s991_s11, %s991_s11 }
  0x35   : > { %p994_p7 = pnand %p992_p5, %p952_p13  ;;  %p1001_p2 = por %p1000_p0, %p999_p12 }
  0x37   : > { %p995_p9 = pneg %p994_p7 }
  0x39   : > { %p1002_p1 = pnand %p1001_p2, %p995_p9 }
  0x3b   : > { %1005 = shalt.err (!%p1002_p1)
}
  0x3c   : > { %s1112_s22 = smov 128   ;;  %s1113_s23 = smov 8  }
  0x3d   : > { %895 = dma.hbm_to_vmem [thread:$0]  (!%p1209_p11), %s1414_s3, 4096, %s1213_s14, [#allocation6], %s1112_s22, %s1112_s22, %s1113_s23  }
  0x3e   : > { %s1268_s13 = sadd.s32 1, %s1106_s27   ;;  %s31_s16 = sadd.s32 1, %s1102_s26 }
  0x3f   : > { %s28_s15 = ssub.s32 %s1106_s27, %s1268_s13  ;;  %p38_p6 = scmp.ne.s32.totalorder %s1102_s26, %s1098_s25 }
  0x40   : > { %p29_p13 = scmp.eq.s32.totalorder %s28_s15, 0  ;;  %p39_p10 = scmp.eq.s32.totalorder %s1106_s27, 0 }
  0x41   : > { %p1426_p5 = scmp.eq.s32.totalorder %s1179_s28, 1  ;;  %p906_p9 = scmp.lt.s32.totalorder %s1106_s27, 2 }
  0x42   : > { %s1277_s17 = scalar_select %p29_p13, %s1102_s26, %s31_s16  }
  0x43   : > { %p40_p3 = por %p39_p10, %p38_p6  ;;  %p1281_p7 = por %p1426_p5, %p38_p6 }
  0x44   : > { %s262_s12 = sand.u32 1, %s1102_s26   ;;  %s778_s14 = sshll.u32 %s1106_s27, 7 }
  0x45   : > { %s1427_s18 = scalar_select %p1281_p7, 1, 0 }
  0x46   : > { %s777_s19 = sshll.u32 %s262_s12, 3  ;;  %s1291_s11 = scalar_lea.hbm %s1411_s0, %s778_s14 }
  0x47   : > { %s266_s22 = scalar_lea.vmem [#allocation2], %s777_s19  ;;  %p1295_p11 = pnand %p906_p9, %p40_p3 }
  0x48   : > { %s273_s23 = sshll.u32 %s266_s22, 4  ;;  %s263_s10 = scalar_lea.sflag [#allocation3], %s262_s12  ;;  %s1293_s23 = int_to_ptr.vmem [resolvable:$true] %s273_s23 }
  0x49   : > { %s1006_s15 = scalar_lea.hbm %s1291_s11, 128  ;;  %p1008_p0 = pneg %p1295_p11 }
  0x4a   : > { %p1007_p12 = scmp.ne.s32.totalorder %s1291_s11, %s1006_s15  ;;  %s1011_s14 = scalar_lea.hbm %s1411_s0, 256 }
  0x4b   : > { %p1012_p13 = scmp.lt.u32.totalorder %s1291_s11, %s1411_s0  ;;  %p1013_p6 = scmp.lt.u32.totalorder %s1011_s14, %s1006_s15 }
  0x4c   : > { %p1009_p2 = pnand %p1008_p0, %p1007_p12  ;;  %p1015_p3 = scmp.lt.u32.totalorder %s1006_s15, %s1291_s11 }
  0x4d   : > { %p1014_p10 = por %p1013_p6, %p1012_p13 }
  0x4e   : > { %p1010_p1 = pneg %p1009_p2 }
  0x4f   : > { %p1016_p5 = por %p1015_p3, %p1014_p10 }
  0x51   : > { %p1017_p9 = pnand %p1016_p5, %p1010_p1 }
  0x53   : > { %1020 = shalt.err (!%p1017_p9)
}
  0x54   : > { %s1021_s12 = scalar_lea.vmem %s1293_s23, 128  ;;  %s1114_s22 = smov [#allocation2]  }
  0x55   : > { %p1022_p12 = scmp.ne.s32.totalorder %s1293_s23, %s1021_s12  ;;  %s1026_s16 = sshll.u32 %s1114_s22, 4  ;;  %s1027_s16 = int_to_ptr.vmem [resolvable:$false] %s1026_s16 }
  0x56   : > { %s1028_s19 = scalar_lea.vmem %s1027_s16, 256  ;;  %p1029_p4 = scmp.lt.s32.totalorder %s1293_s23, %s1027_s16 }
  0x57   : > { %p1024_p2 = pnand %p1022_p12, %p1008_p0  ;;  %p1030_p13 = scmp.lt.s32.totalorder %s1028_s19, %s1021_s12 }
  0x59   : > { %p1025_p7 = pneg %p1024_p2  ;;  %p1031_p6 = por %p1030_p13, %p1029_p4 }
  0x5b   : > { %p1032_p10 = pnand %p1031_p6, %p1025_p7 }
  0x5d   : > { %1035 = shalt.err (!%p1032_p10)
}
  0x5e   : > { %899 = dma.hbm_to_vmem [thread:$0]  (!%p1295_p11), %s1291_s11, 128, %s1293_s23, %s263_s10  }
  0x5f   : > { %297 = sbr.rel (%p1198_p8) target bundleno = 568 (0x238), region = 48  ;;  %s1327_s15 = sand.u32 (!%p1198_p8), 1, %s1098_s25  }
  0x60   : > { %s780_s14 = sshll.u32 (!%p1198_p8), %s1327_s15, 3  ;;  %s300_s20 = scalar_lea.sflag (!%p1198_p8), [#allocation3], %s1327_s15 }
  0x61   : > { %s1333_s21 = scalar_lea.vmem (!%p1198_p8), [#allocation2], %s780_s14  ;;  %p1429_p4 = scmp.ne.s32.totalorder (!%p1198_p8), %s1422_s30, 0 }
  0x66   : > { %1081 = dma.done.wait (%p1429_p4), %s300_s20, 128  }
  0x67   : > { %1083 = vsyncadd (%p1429_p4), %s300_s20, 4294967168  ;;  %p1430_p7 = scmp.eq.s32.totalorder %s1179_s28, 0 }
  0x69   : > { %1085 = dma.done.wait (%p1430_p7), [#allocation6], 5120   ;;  %p1431_p8 = pmov %p1430_p7 }
  0x6a   : > { %v1115_v0 = vmov 0.0   ;;  %v362_v1 = vld [vmem:[#allocation5 + $0x8] sm:$0xff]  ;;  %v364_v2 = vld [vmem:[#allocation5 + $0x18] sm:$0xff]  ;;  %v361_v3 = vld [vmem:[#allocation5] sm:$0xff]  ;;  %vm381_vm0 = vcmask 261120   ;;  %p351_p11 = scmp.lt.s32.totalorder %s1179_s28, 1 }
  0x6b   : > { %1087 = vsyncadd (%p1431_p8), [#allocation6], 4294962176  ;;  %449 = vmatprep.mubr.f32.mxu0 %v1115_v0  ;;  %v837_v4 = vpack.c.bf16 %v364_v2, %v362_v1  ;;  %v363_v5 = vld [vmem:[#allocation5 + $0x10] sm:$0xff]  ;;  %v366_v6 = vld [vmem:[#allocation5 + $0x28] sm:$0xff]  ;;  %vm500_vm1 = vcmask 1043456   ;;  %vm496_vm2 = vcmask 31744   ;;  %v371_v1 = vlaneseq }
  0x6c   : > { %v368_v7 = vld [vmem:[#allocation5 + $0x38] sm:$0xff]  ;;  %v839_v8 = vpack.c.bf16 %v363_v5, %v361_v3  ;;  %v365_v10 = vld [vmem:[#allocation5 + $0x20] sm:$0xff]  ;;  %v367_v11 = vld [vmem:[#allocation5 + $0x30] sm:$0xff]  ;;  %s352_s30 = scalar_select %p351_p11, %s1179_s28, 1  ;;  %vm1116_vm3 = vmmov 0  }
  0x6d   : > { %v841_v9 = vpack.c.bf16 %v368_v7, %v366_v6  ;;  %838 = vmatprep.subr.bf16.mxu0 %v837_v4  ;;  %v478_v12 = vld [vmem:[#allocation7 + $0x80] sm:$0xff]  ;;  %v479_v13 = vld [vmem:[#allocation7 + $0x88] sm:$0xff]  ;;  %v843_v15 = vpack.c.bf16 %v367_v11, %v365_v10  ;;  %v480_v18 = vld [vmem:[#allocation7 + $0x90] sm:$0xff]  ;;  %v372_v2 = vshrl.u32 %v371_v1, 7  ;;  %s350_s11 = scalar_lea.vmem [#allocation8], %s780_s14  ;;  %s646_s22 = scalar_lea.sflag [#allocation4], %s1327_s15 }
  0x6e   : > { %v462_v14 = vld [vmem:[#allocation7] sm:$0xff]  ;;  %840 = vmatpush1.bf16.msra.mxu0 %v839_v8  ;;  %v845_v16 = vpack.c.bf16 %v479_v13, %v478_v12  ;;  %v463_v17 = vld [vmem:[#allocation7 + $0x8] sm:$0xff]  ;;  %v481_v19 = vld [vmem:[#allocation7 + $0x98] sm:$0xff]  ;;  %s786_s23 = sshll.u32 %s352_s30, 3  ;;  %s794_s19 = sshll.u32 %s352_s30, 4 }
  0x6f   : > { %842 = vmatprep.subr.bf16.mxu0 %v841_v9  ;;  %v847_v20 = vpack.c.bf16 %v463_v17, %v462_v14  ;;  %v849_v21 = vpack.c.bf16 %v481_v19, %v480_v18  ;;  %v464_v22 = vld [vmem:[#allocation7 + $0x10] sm:$0xff]  ;;  %v465_v23 = vld [vmem:[#allocation7 + $0x18] sm:$0xff]  ;;  %v482_v24 = vld [vmem:[#allocation7 + $0xa0] sm:$0xff]  ;;  %s359_s12 = scalar_lea.vmem %s1417_s6, %s786_s23  ;;  %v373_v3 = vsub.s32 0, %v372_v2  ;;  %v377_v5 = vsub.s32 1, %v372_v2  ;;  %s355_s9 = scalar_lea.vmem %s1416_s5, %s794_s19 }
  0x70   : > { %846 = vmatprep.subr.bf16.mxu1 %v845_v16  ;;  %v483_v25 = vld [vmem:[#allocation7 + $0xa8] sm:$0xff]  ;;  %v851_v26 = vpack.c.bf16 %v465_v23, %v464_v22  ;;  %v360_v27 = vld [vmem:[%s1333_s21] sm:$0xff]  ;;  %v466_v29 = vld [vmem:[#allocation7 + $0x20] sm:$0xff]  ;;  %s791_s30 = sshll.u32 %s1179_s28, 7  ;;  %s659_s23 = sshll.u32 %s350_s11, 4  ;;  %s1369_s23 = int_to_ptr.vmem [resolvable:$true] %s659_s23 }
  0x71   : > { %848 = vmatpush3.bf16.msra.mxu1 %v847_v20  ;;  %v853_v28 = vpack.c.bf16 %v483_v25, %v482_v24  ;;  %v467_v30 = vld [vmem:[#allocation7 + $0x28] sm:$0xff]  ;;  %v484_v31 = vld [vmem:[#allocation7 + $0xb0] sm:$0xff]  ;;  %v485_v32 = vld [vmem:[#allocation7 + $0xb8] sm:$0xff]  ;;  %s1036_s16 = scalar_lea.vmem %s1369_s23, 128  ;;  %p1432_p1 = scmp.ne.s32.totalorder %s1427_s18, 0 }
  0x72   : > { %844 = vmatpush1.bf16.msra.mxu0 %v843_v15  ;;  %850 = vmatprep.subr.bf16.mxu1 %v849_v21  ;;  %v855_v33 = vpack.c.bf16 %v467_v30, %v466_v29  ;;  %v857_v34 = vpack.c.bf16 %v485_v32, %v484_v31  ;;  %v468_v35 = vld [vmem:[#allocation7 + $0x30] sm:$0xff]  ;;  %v469_v36 = vld [vmem:[#allocation7 + $0x38] sm:$0xff]  ;;  %v486_v37 = vld [vmem:[#allocation7 + $0xc0] sm:$0xff]  ;;  %p1037_p0 = scmp.ne.s32.totalorder %s1369_s23, %s1036_s16  ;;  %s1117_s28 = smov [#allocation8]  }
  0x73   : > { %832 = vmatprep.subr.mxu0 %v1115_v0  ;;  %v487_v38 = vld [vmem:[#allocation7 + $0xc8] sm:$0xff]  ;;  %v859_v39 = vpack.c.bf16 %v469_v36, %v468_v35  ;;  %v470_v41 = vld [vmem:[#allocation7 + $0x40] sm:$0xff]  ;;  %v488_v43 = vld [vmem:[#allocation7 + $0xd0] sm:$0xff]  ;;  %s1040_s14 = sshll.u32 %s1117_s28, 4  ;;  %s1041_s14 = int_to_ptr.vmem [resolvable:$false] %s1040_s14 }
  0x74   : > { %v861_v40 = vpack.c.bf16 %v487_v38, %v486_v37  ;;  %v471_v42 = vld [vmem:[#allocation7 + $0x48] sm:$0xff]  ;;  %v489_v44 = vld [vmem:[#allocation7 + $0xd8] sm:$0xff]  ;;  %v472_v47 = vld [vmem:[#allocation7 + $0x50] sm:$0xff]  ;;  %p1038_p3 = pnand %p1037_p0, %p1432_p1  ;;  %s1042_s19 = scalar_lea.vmem %s1041_s14, 256 }
  0x75   : > { %787 = vmatmul.mubr.msk.f32.vlgmr.msra.gmra.mrb[0].mxu0 %vm381_vm0, %v360_v27  ;;  %852 = vmatpush3.bf16.msra.mxu1 %v851_v26  ;;  %v863_v45 = vpack.c.bf16 %v471_v42, %v470_v41  ;;  %v865_v46 = vpack.c.bf16 %v489_v44, %v488_v43  ;;  %v473_v48 = vld [vmem:[#allocation7 + $0x58] sm:$0xff]  ;;  %v490_v50 = vld [vmem:[#allocation7 + $0xe0] sm:$0xff]  ;;  %v491_v51 = vld [vmem:[#allocation7 + $0xe8] sm:$0xff]  ;;  %p1043_p9 = scmp.lt.s32.totalorder %s1369_s23, %s1041_s14  ;;  %p1044_p12 = scmp.lt.s32.totalorder %s1042_s19, %s1036_s16 }
  0x76   : > { %854 = vmatprep.subr.bf16.mxu1 %v853_v28  ;;  %v867_v49 = vpack.c.bf16 %v473_v48, %v472_v47  ;;  %v869_v52 = vpack.c.bf16 %v491_v51, %v490_v50  ;;  %v474_v53 = vld [vmem:[#allocation7 + $0x60] sm:$0xff]  ;;  %v475_v54 = vld [vmem:[#allocation7 + $0x68] sm:$0xff]  ;;  %v492_v56 = vld [vmem:[#allocation7 + $0xf0] sm:$0xff]  ;;  %834 = vmatprep.mubr.msk.f32.mxu0 %vm1116_vm3, %v1115_v0  ;;  %p1039_p5 = pneg %p1038_p3 }
  0x77   : > { %v871_v55 = vpack.c.bf16 %v475_v54, %v474_v53  ;;  %v493_v57 = vld [vmem:[#allocation7 + $0xf8] sm:$0xff]  ;;  %v476_v59 = vld [vmem:[#allocation7 + $0x70] sm:$0xff]  ;;  %p1045_p2 = por %p1044_p12, %p1043_p9 }
  0x78   : > { %v873_v58 = vpack.c.bf16 %v493_v57, %v492_v56  ;;  %v477_v60 = vld [vmem:[#allocation7 + $0x78] sm:$0xff]  ;;  %v495_v62 = vld [vmem:[%s1415_s4] sm:$0xf] }
  0x79   : > { %856 = vmatpush3.bf16.msra.mxu1 %v855_v33  ;;  %v875_v61 = vpack.c.bf16 %v477_v60, %v476_v59  ;;  %833 = vmatpush3.msk.msra.mxu0 %vm500_vm1, %v495_v62  ;;  %v494_v63 = vld [vmem:[%s359_s12] sm:$0xff]  ;;  %v459_v13 = vld [vmem:[%s355_s9 + $0x8] sm:$0xff]  ;;  %s1367_s12 = scalar_lea.hbm %s1418_s7, %s791_s30  ;;  %p1046_p13 = pnand %p1045_p2, %p1039_p5 }
  0x7a   : > { %858 = vmatprep.subr.bf16.mxu1 %v857_v34  ;;  %835 = vmatmul.mubr.msk.f32.vlgmr.msra.gmra.mrb[2].mxu0 %vm496_vm2, %v494_v63  ;;  %v369_v4 = vld [vmem:[%s1413_s2] sm:$0x3] }
  0x7b   : > { %v374_v6 = vrot.slane %v369_v4, %v373_v3  ;;  %v378_v7 = vrot.slane %v369_v4, %v377_v5  ;;  %v458_v11 = vld [vmem:[%s355_s9] sm:$0xff] }
  0x7d   : > { %860 = vmatpush3.bf16.msra.mxu1 %v859_v39 }
  0x7e   : > { %862 = vmatprep.subr.bf16.mxu1 %v861_v40 }
  0x81   : > { %864 = vmatpush3.bf16.msra.mxu1 %v863_v45 }
  0x82   : > { %866 = vmatprep.subr.bf16.mxu1 %v865_v46 }
  0x85   : > { %868 = vmatpush3.bf16.msra.mxu1 %v867_v49 }
  0x86   : > { %870 = vmatprep.subr.bf16.mxu1 %v869_v52 }
  0x89   : > { %872 = vmatpush3.bf16.msra.mxu1 %v871_v55 }
  0x8a   : > { %874 = vmatprep.subr.bf16.mxu1 %v873_v58 }
  0x8d   : > { %876 = vmatpush3.bf16.msra.mxu1 %v875_v61 }
 0x148   : > { %v451_v8 = vpop.f32.mrb[0].mxu0 }
 0x149   : > { %v452_v9 = vadd.f32 %v451_v8, %v374_v6  ;;  %v453_v0 = vpop.f32.mrb[1].mxu0 }
 0x14a   : > { %v454_v10 = vadd.f32 %v453_v0, %v378_v7 }
 0x14b   : > { %v456_v12 = vmax.f32 %v452_v9, 0.0 }
 0x14c   : > { %v457_v14 = vmax.f32 %v454_v10, 0.0 }
 0x14d   : > { %v460_v15 = vmul.f32 %v458_v11, %v456_v12  ;;  %v570_v17 = vpop.f32.mrb[2].mxu0 }
 0x14e   : > { %v461_v16 = vmul.f32 %v459_v13, %v457_v14  ;;  %v836_v18 = vpop.f32.mrb[3].mxu0 }
 0x150   : > { %638 = vmatprep.mubr.f32.mxu1 %v461_v16 }
 0x151   : > { %639 = vmatmul.mubr.f32.vlgmr.msra.gmra.mrb[0].mxu1 %v460_v15 }
 0x224   : > { %v829_v19 = vpop.f32.mrb[0].mxu1 }
 0x225   : > { %v830_v20 = vpop.f32.mrb[1].mxu1 }
 0x226   : > { %v831_v21 = vadd.f32 %v830_v20, %v829_v19 }
 0x228   : > { %v641_v22 = vadd.f32 %v831_v21, %v570_v17 }
 0x22a   : > { %644 = vst [vmem:[%s350_s11] sm:$0xff] %v641_v22 }
 0x22b   : > { %1049 = shalt.err (!%p1046_p13)
}
 0x22c   : > { %s1050_s15 = scalar_lea.hbm %s1367_s12, 128  ;;  %s1054_s9 = scalar_lea.hbm %s1418_s7, 256 }
 0x22d   : > { %p1051_p6 = scmp.ne.s32.totalorder %s1367_s12, %s1050_s15  ;;  %p1055_p7 = scmp.lt.u32.totalorder %s1367_s12, %s1418_s7 }
 0x22e   : > { %p1056_p8 = scmp.lt.u32.totalorder %s1054_s9, %s1050_s15  ;;  %p1058_p0 = scmp.lt.u32.totalorder %s1050_s15, %s1367_s12 }
 0x22f   : > { %p1052_p10 = pnand %p1051_p6, %p1432_p1 }
 0x230   : > { %p1057_p11 = por %p1056_p8, %p1055_p7 }
 0x231   : > { %p1053_p4 = pneg %p1052_p10 }
 0x232   : > { %p1059_p3 = por %p1058_p0, %p1057_p11 }
 0x234   : > { %p1060_p5 = pnand %p1059_p3, %p1053_p4 }
 0x236   : > { %1063 = shalt.err (!%p1060_p5)
}
 0x237   : > { %887 = dma.vmem_to_hbm [thread:$0]  (%p1432_p1), %s1369_s23, 128, %s1367_s12, %s646_s22  }
 0x238 PF: > { %s671_s29 = sand.u32 1, %s1094_s24   ;;  %p1433_p9 = scmp.ne.s32.totalorder %s1423_s8, 0 }
 0x239   : > { %p1434_p12 = scmp.ge.s32.totalorder %s1106_s27, 2  ;;  %s672_s10 = scalar_lea.sflag [#allocation4], %s671_s29 }
 0x23b   : > { %p901_p2 = pnand %p1434_p12, %p1433_p9 }
 0x23d   : > { %1089 = dma.done.wait (!%p901_p2), %s672_s10, 128  }
 0x23e   : > { %1091 = vsyncadd (!%p901_p2), %s672_s10, 4294967168  ;;  %p21_p13 = scmp.ge.s32.totalorder %s1268_s13, 4   ;;  %s1435_s24 = smov %s1098_s25 }
 0x23f   : > { %s1436_s25 = smov %s1102_s26  ;;  %s1437_s26 = smov %s1277_s17 }
 0x240   : > { %s1438_s27 = smov %s1268_s13  ;;  %23 = sbr.rel (!%p21_p13) target bundleno = 6 (0x6), region = 107 }
 0x247   :  { %677 = vsyncpa [#allocation3], 1 }
 0x248   :  { %679 = vsyncpa [#allocation3 + $0x1], 1 }
 0x249   :  { %680 = vsyncpa [#allocation6], 1 }
 0x24a   :  { %681 = vsyncpa [#allocation4], 1 }
 0x24b   :  { %683 = vsyncpa [#allocation4 + $0x1], 1 }

</bundles_post_ra>
